<compile_context>
chip_gen: v5e
topology: v5e:2x2
jax: 0.10.0
libtpu: 0.0.40
codegen_flags: <defaults>
</compile_context>

<pallas_src>
import functools

import jax
import jax.numpy as jnp
from jax.experimental import pallas as pl
from jax.experimental.pallas import tpu as pltpu

_LANE = 128  # lane-dense width for hidden/output slabs


def _round_up(v, m):
    return (v + m - 1) // m * m


def _multi_tensorcore():
    """True on chips with >1 TensorCore (v7x): split branches across cores."""
    try:
        kind = jax.devices()[0].device_kind.lower()
    except Exception:
        return False
    return ("v7" in kind) or ("tpu7" in kind)


# -----------------------------------------------------------------------------
# Kernel factory: one grid step processes `bps` branches (statically unrolled).
#   h1  = PReLU(x  @ W1 + b1, a1)
#   h2  = PReLU(h1 @ W2 + b2, a2)
#   out =        h2 @ W3 + b3          (W3/b3 zero-padded to lane-dense width)
# Weights are bf16, accumulation f32.  PReLU scalars are flat in SMEM as
# [a1_br0, a2_br0, a1_br1, a2_br1, ...].
# -----------------------------------------------------------------------------
def _make_siamese_kernel(bps):
    def kernel(prelu_ref,                 # SMEM (2 * n_branches,) f32
               x_ref,                     # (bps, B, in_dim)        bf16
               w1_ref,                    # (bps, in_dim, P)        bf16
               w23_ref,                   # (bps, 2, P, P)          bf16
               b_ref,                     # (bps, 3, P)             f32
               out_ref):                  # (bps, B, P)             f32
        base = pl.program_id(0) * bps
        for j in range(bps):              # static unroll over branches in block
            x = x_ref[j]
            w1 = w1_ref[j]
            wk = w23_ref[j]               # (2, P, P)
            bb = b_ref[j]                 # (3, P)

            h = jnp.dot(x, w1, preferred_element_type=jnp.float32) + bb[0:1, :]
            a1 = prelu_ref[2 * (base + j)]
            h = jnp.where(h >= 0.0, h, a1 * h)

            h = jnp.dot(h.astype(jnp.bfloat16), wk[0],
                        preferred_element_type=jnp.float32) + bb[1:2, :]
            a2 = prelu_ref[2 * (base + j) + 1]
            h = jnp.where(h >= 0.0, h, a2 * h)

            out = jnp.dot(h.astype(jnp.bfloat16), wk[1],
                          preferred_element_type=jnp.float32) + bb[2:3, :]
            out_ref[j] = out.astype(out_ref.dtype)

    return kernel


# -----------------------------------------------------------------------------
# One-time parameter packing (hoisted out of the forward path).
# -----------------------------------------------------------------------------
def _pack_params(param_list):
    in_dim, hidden = param_list[0][0].shape
    emb_dim = param_list[0][6].shape[1]
    p = _round_up(max(hidden, emb_dim), _LANE)

    def pad2(w, rows, cols):
        return jnp.pad(w, ((0, rows - w.shape[0]), (0, cols - w.shape[1])))

    w1s, w23s, bs, prelu = [], [], [], []
    for (w1, b1, a1, w2, b2, a2, w3, b3) in param_list:
        w1s.append(pad2(w1, in_dim, p).astype(jnp.bfloat16))
        w23s.append(jnp.stack([pad2(w2, p, p),
                               pad2(w3, p, p)]).astype(jnp.bfloat16))
        bs.append(jnp.stack([pad2(b1, 1, p)[0],
                             pad2(b2, 1, p)[0],
                             pad2(b3, 1, p)[0]]).astype(jnp.float32))
        prelu.extend([jnp.reshape(a1, ()), jnp.reshape(a2, ())])

    return dict(
        w1=jnp.stack(w1s),                               # (n_br, in_dim, P) bf16
        w23=jnp.stack(w23s),                             # (n_br, 2, P, P)   bf16
        b=jnp.stack(bs),                                 # (n_br, 3, P)      f32
        prelu=jnp.stack(prelu).astype(jnp.float32),      # (2*n_br,)   SMEM  f32
    )


# -----------------------------------------------------------------------------
# Single pallas_call over all branches.
# -----------------------------------------------------------------------------
def _run_branches(x, packed):
    """x: (n_br, B, in_dim) bf16 -> (n_br, B, P) f32 (lane-padded embeddings)."""
    n_br, b, in_dim = x.shape
    w1, w23, bias, prelu = packed["w1"], packed["w23"], packed["b"], packed["prelu"]
    p = w1.shape[-1]

    # v7x: one branch per grid step, sharded across the 2 TensorCores.
    # v5e/v6e (single TC): fuse all branches into one grid step.
    bps = 1 if (_multi_tensorcore() and n_br > 1) else n_br
    n_steps = n_br // bps

    def spec(shape):
        return pl.BlockSpec((bps,) + shape, lambda i: (i,) + (0,) * len(shape))

    flops = n_br * 2 * b * (in_dim * p + 2 * p * p)
    bytes_accessed = (x.size * x.dtype.itemsize
                      + w1.size * w1.dtype.itemsize
                      + w23.size * w23.dtype.itemsize
                      + bias.size * bias.dtype.itemsize
                      + prelu.size * prelu.dtype.itemsize
                      + n_br * b * p * 4)

    return pl.pallas_call(
        _make_siamese_kernel(bps),
        out_shape=jax.ShapeDtypeStruct((n_br, b, p), jnp.float32),
        grid=(n_steps,),
        in_specs=[
            pl.BlockSpec(memory_space=pltpu.MemorySpace.SMEM),  # PReLU scalars
            spec((b, in_dim)),       # x
            spec((in_dim, p)),       # W1
            spec((2, p, p)),         # W2 | padded W3   (packed)
            spec((3, p)),            # b1 | b2 | padded b3 (packed)
        ],
        out_specs=spec((b, p)),
        compiler_params=pltpu.CompilerParams(
            dimension_semantics=("parallel",)),
        cost_estimate=pl.CostEstimate(
            flops=flops, transcendentals=0, bytes_accessed=bytes_accessed),
    )(prelu, x, w1, w23, bias)


# -----------------------------------------------------------------------------
# SiameseNet "module": pack params once, return jitted forward / get_embedding.
# -----------------------------------------------------------------------------
def make_siamese_net(params_net1, params_net2):
    packed = _pack_params([params_net1, params_net2])   # hoisted, runs once
    emb_dim = params_net1[6].shape[1]

    @jax.jit
    def forward(x1, x2):
        x = jnp.stack([x1.reshape(x1.shape[0], -1),
                       x2.reshape(x2.shape[0], -1)]).astype(jnp.bfloat16)
        out = _run_branches(x, packed)                   # (2, B, P)
        return out[0, :, :emb_dim], out[1, :, :emb_dim]

    @functools.partial(jax.jit, static_argnames=("domain",))
    def get_embedding(x, domain="primary"):
        d = 0 if domain == "primary" else 1
        xf = x.reshape(x.shape[0], -1).astype(jnp.bfloat16)[None]
        sub = dict(w1=packed["w1"][d:d + 1], w23=packed["w23"][d:d + 1],
                   b=packed["b"][d:d + 1], prelu=packed["prelu"][2 * d:2 * d + 2])
        return _run_branches(xf, sub)[0, :, :emb_dim]

    return forward, get_embedding


# -----------------------------------------------------------------------------
# Deterministic parameter init (synthetic weights, no checkpoint load).
# -----------------------------------------------------------------------------
def _init_embedding_params(key, in_dim, hidden, emb_dim):
    k1, k2, k3 = jax.random.split(key, 3)
    scale1 = 1.0 / jnp.sqrt(in_dim)
    scale2 = 1.0 / jnp.sqrt(hidden)
    w1 = jax.random.normal(k1, (in_dim, hidden), jnp.float32) * scale1
    b1 = jnp.zeros((1, hidden), jnp.float32)
    a1 = jnp.full((1, 1), 0.25, jnp.float32)        # PReLU default init
    w2 = jax.random.normal(k2, (hidden, hidden), jnp.float32) * scale2
    b2 = jnp.zeros((1, hidden), jnp.float32)
    a2 = jnp.full((1, 1), 0.25, jnp.float32)
    w3 = jax.random.normal(k3, (hidden, emb_dim), jnp.float32) * scale2
    b3 = jnp.zeros((1, emb_dim), jnp.float32)
    return (w1, b1, a1, w2, b2, a2, w3, b3)


if __name__ == "__main__":
    B, C, H, W = 2, 4, 16, 16          # NCHW
    HIDDEN, EMB = 128, 32
    in_dim = C * H * W

    root = jax.random.PRNGKey(0)
    kx1, kx2, kp1, kp2 = jax.random.split(root, 4)

    x1 = jax.random.normal(kx1, (B, C, H, W), jnp.float32)
    x2 = jax.random.normal(kx2, (B, C, H, W), jnp.float32)

    params_net1 = _init_embedding_params(kp1, in_dim, HIDDEN, EMB)
    params_net2 = _init_embedding_params(kp2, in_dim, HIDDEN, EMB)

    forward, get_embedding = make_siamese_net(params_net1, params_net2)

    out1, out2 = forward(x1, x2)
    jax.block_until_ready((out1, out2))
    emb1 = get_embedding(x1, domain="primary")
    jax.block_until_ready(emb1)

    # Pure-JAX references (same math, no Pallas).  `quantize=True` mirrors the
    # kernel's bf16 weight/activation storage with f32 accumulation.
    def ref_embed(x, p, quantize):
        w1, b1, a1, w2, b2, a2, w3, b3 = p
        q = (lambda t: t.astype(jnp.bfloat16).astype(jnp.float32)) if quantize \
            else (lambda t: t)
        h = q(x.reshape(x.shape[0], -1)) @ q(w1) + b1
        h = jnp.where(h >= 0, h, a1[0, 0] * h)
        h = q(h) @ q(w2) + b2
        h = jnp.where(h >= 0, h, a2[0, 0] * h)
        return q(h) @ q(w3) + b3

    r1 = ref_embed(x1, params_net1, True)
    r2 = ref_embed(x2, params_net2, True)

    assert out1.shape == (B, EMB) and out2.shape == (B, EMB)
    assert out1.dtype == jnp.float32 and out2.dtype == jnp.float32
    assert jnp.allclose(out1, r1, atol=1e-2, rtol=1e-2)
    assert jnp.allclose(out2, r2, atol=1e-2, rtol=1e-2)
    assert jnp.allclose(emb1, out1, atol=1e-5, rtol=1e-5)

    # Loose sanity check against the full-f32 reference (bf16 weight storage).
    rf1 = ref_embed(x1, params_net1, False)
    assert jnp.allclose(out1, rf1, atol=5e-2, rtol=5e-2)

    print("KERNEL_OK")
</pallas_src>

<mosaic_0001>
module attributes {stable_mosaic.version = 11 : i64} {
  func.func @kernel(%arg0: i32, %arg1: memref<4xf32, #tpu.memory_space<smem>>, %arg2: memref<2x2x1024xbf16, #tpu.memory_space<vmem>>, %arg3: memref<2x1024x128xbf16, #tpu.memory_space<vmem>>, %arg4: memref<2x2x128x128xbf16, #tpu.memory_space<vmem>>, %arg5: memref<2x3x128xf32, #tpu.memory_space<vmem>>, %arg6: memref<2x2x128xf32, #tpu.memory_space<vmem>>) attributes {dimension_semantics = [#tpu.dimension_semantics<parallel>], iteration_bounds = array<i64: 1>, scalar_prefetch = 0 : i64, scratch_operands = 0 : i64, tpu.core_type = #tpu.core_type<tc>, window_params = [{transform_indices = @transform_0, window_bounds = array<i64: 4>}, {transform_indices = @transform_1, window_bounds = array<i64: 2, 2, 1024>}, {transform_indices = @transform_2, window_bounds = array<i64: 2, 1024, 128>}, {transform_indices = @transform_3, window_bounds = array<i64: 2, 2, 128, 128>}, {transform_indices = @transform_4, window_bounds = array<i64: 2, 3, 128>}, {transform_indices = @transform_5, window_bounds = array<i64: 2, 2, 128>}]} {
    %c2_i32 = arith.constant 2 : i32
    %0 = arith.muli %arg0, %c2_i32 : i32
    %c0 = arith.constant 0 : index
    %c0_0 = arith.constant 0 : index
    %c0_1 = arith.constant 0 : index
    %1 = vector.load %arg2[%c0, %c0_0, %c0_1] : memref<2x2x1024xbf16, #tpu.memory_space<vmem>>, vector<1x2x1024xbf16>
    %2 = vector.shape_cast %1 : vector<1x2x1024xbf16> to vector<2x1024xbf16>
    %c0_2 = arith.constant 0 : index
    %c0_3 = arith.constant 0 : index
    %c0_4 = arith.constant 0 : index
    %3 = vector.load %arg3[%c0_2, %c0_3, %c0_4] : memref<2x1024x128xbf16, #tpu.memory_space<vmem>>, vector<1x1024x128xbf16>
    %4 = vector.shape_cast %3 : vector<1x1024x128xbf16> to vector<1024x128xbf16>
    %c0_5 = arith.constant 0 : index
    %c0_6 = arith.constant 0 : index
    %c0_7 = arith.constant 0 : index
    %c0_8 = arith.constant 0 : index
    %5 = vector.load %arg4[%c0_5, %c0_6, %c0_7, %c0_8] : memref<2x2x128x128xbf16, #tpu.memory_space<vmem>>, vector<1x2x128x128xbf16>
    %6 = vector.shape_cast %5 : vector<1x2x128x128xbf16> to vector<2x128x128xbf16>
    %c0_9 = arith.constant 0 : index
    %c0_10 = arith.constant 0 : index
    %c0_11 = arith.constant 0 : index
    %7 = vector.load %arg5[%c0_9, %c0_10, %c0_11] : memref<2x3x128xf32, #tpu.memory_space<vmem>>, vector<1x3x128xf32>
    %8 = vector.shape_cast %7 : vector<1x3x128xf32> to vector<3x128xf32>
    %cst = arith.constant dense<0.000000e+00> : vector<2x128xf32>
    %9 = tpu.matmul %2, %4, %cst {dimension_numbers = #tpu.dot_dimension_numbers<[1], [0], [0], [1], [0, 0, 1, 1], [], []>} : vector<2x1024xbf16>, vector<1024x128xbf16>, vector<2x128xf32> -> vector<2x128xf32>
    %10 = vector.extract_strided_slice %8 {offsets = [0, 0], sizes = [1, 128], strides = [1, 1]} : vector<3x128xf32> to vector<1x128xf32>
    %11 = vector.broadcast %10 : vector<1x128xf32> to vector<2x128xf32>
    %12 = arith.addf %9, %11 : vector<2x128xf32>
    %c0_i32 = arith.constant 0 : i32
    %13 = arith.addi %0, %c0_i32 : i32
    %c2_i32_12 = arith.constant 2 : i32
    %14 = arith.muli %c2_i32_12, %13 : i32
    %15 = arith.index_cast %14 : i32 to index
    %16 = memref.load %arg1[%15] : memref<4xf32, #tpu.memory_space<smem>>
    %cst_13 = arith.constant 0.000000e+00 : f32
    %17 = vector.broadcast %cst_13 : f32 to vector<2x128xf32>
    %18 = arith.cmpf oge, %12, %17 : vector<2x128xf32>
    %19 = vector.broadcast %16 : f32 to vector<2x128xf32>
    %20 = arith.mulf %19, %12 : vector<2x128xf32>
    %21 = arith.select %18, %12, %20 : vector<2x128xi1>, vector<2x128xf32>
    %22 = arith.truncf %21 : vector<2x128xf32> to vector<2x128xbf16>
    %23 = vector.extract_strided_slice %6 {offsets = [0, 0, 0], sizes = [1, 128, 128], strides = [1, 1, 1]} : vector<2x128x128xbf16> to vector<1x128x128xbf16>
    %24 = vector.shape_cast %23 : vector<1x128x128xbf16> to vector<128x128xbf16>
    %cst_14 = arith.constant dense<0.000000e+00> : vector<2x128xf32>
    %25 = tpu.matmul %22, %24, %cst_14 {dimension_numbers = #tpu.dot_dimension_numbers<[1], [0], [0], [1], [0, 0, 1, 1], [], []>} : vector<2x128xbf16>, vector<128x128xbf16>, vector<2x128xf32> -> vector<2x128xf32>
    %26 = vector.extract_strided_slice %8 {offsets = [1, 0], sizes = [1, 128], strides = [1, 1]} : vector<3x128xf32> to vector<1x128xf32>
    %27 = vector.broadcast %26 : vector<1x128xf32> to vector<2x128xf32>
    %28 = arith.addf %25, %27 : vector<2x128xf32>
    %c0_i32_15 = arith.constant 0 : i32
    %29 = arith.addi %0, %c0_i32_15 : i32
    %c2_i32_16 = arith.constant 2 : i32
    %30 = arith.muli %c2_i32_16, %29 : i32
    %c1_i32 = arith.constant 1 : i32
    %31 = arith.addi %30, %c1_i32 : i32
    %32 = arith.index_cast %31 : i32 to index
    %33 = memref.load %arg1[%32] : memref<4xf32, #tpu.memory_space<smem>>
    %cst_17 = arith.constant 0.000000e+00 : f32
    %34 = vector.broadcast %cst_17 : f32 to vector<2x128xf32>
    %35 = arith.cmpf oge, %28, %34 : vector<2x128xf32>
    %36 = vector.broadcast %33 : f32 to vector<2x128xf32>
    %37 = arith.mulf %36, %28 : vector<2x128xf32>
    %38 = arith.select %35, %28, %37 : vector<2x128xi1>, vector<2x128xf32>
    %39 = arith.truncf %38 : vector<2x128xf32> to vector<2x128xbf16>
    %40 = vector.extract_strided_slice %6 {offsets = [1, 0, 0], sizes = [1, 128, 128], strides = [1, 1, 1]} : vector<2x128x128xbf16> to vector<1x128x128xbf16>
    %41 = vector.shape_cast %40 : vector<1x128x128xbf16> to vector<128x128xbf16>
    %cst_18 = arith.constant dense<0.000000e+00> : vector<2x128xf32>
    %42 = tpu.matmul %39, %41, %cst_18 {dimension_numbers = #tpu.dot_dimension_numbers<[1], [0], [0], [1], [0, 0, 1, 1], [], []>} : vector<2x128xbf16>, vector<128x128xbf16>, vector<2x128xf32> -> vector<2x128xf32>
    %43 = vector.extract_strided_slice %8 {offsets = [2, 0], sizes = [1, 128], strides = [1, 1]} : vector<3x128xf32> to vector<1x128xf32>
    %44 = vector.broadcast %43 : vector<1x128xf32> to vector<2x128xf32>
    %45 = arith.addf %42, %44 : vector<2x128xf32>
    %c0_19 = arith.constant 0 : index
    %c0_20 = arith.constant 0 : index
    %c0_21 = arith.constant 0 : index
    %46 = vector.load %arg6[%c0_19, %c0_20, %c0_21] : memref<2x2x128xf32, #tpu.memory_space<vmem>>, vector<1x2x128xf32>
    %47 = vector.shape_cast %46 : vector<1x2x128xf32> to vector<2x128xf32>
    %48 = vector.shape_cast %45 : vector<2x128xf32> to vector<1x2x128xf32>
    tpu.vector_store %arg6[%c0_19, %c0_20, %c0_21], %48 {strides = array<i32>} : memref<2x2x128xf32, #tpu.memory_space<vmem>>, vector<1x2x128xf32>,
    %c1 = arith.constant 1 : index
    %c0_22 = arith.constant 0 : index
    %c0_23 = arith.constant 0 : index
    %49 = vector.load %arg2[%c1, %c0_22, %c0_23] : memref<2x2x1024xbf16, #tpu.memory_space<vmem>>, vector<1x2x1024xbf16>
    %50 = vector.shape_cast %49 : vector<1x2x1024xbf16> to vector<2x1024xbf16>
    %c1_24 = arith.constant 1 : index
    %c0_25 = arith.constant 0 : index
    %c0_26 = arith.constant 0 : index
    %51 = vector.load %arg3[%c1_24, %c0_25, %c0_26] : memref<2x1024x128xbf16, #tpu.memory_space<vmem>>, vector<1x1024x128xbf16>
    %52 = vector.shape_cast %51 : vector<1x1024x128xbf16> to vector<1024x128xbf16>
    %c1_27 = arith.constant 1 : index
    %c0_28 = arith.constant 0 : index
    %c0_29 = arith.constant 0 : index
    %c0_30 = arith.constant 0 : index
    %53 = vector.load %arg4[%c1_27, %c0_28, %c0_29, %c0_30] : memref<2x2x128x128xbf16, #tpu.memory_space<vmem>>, vector<1x2x128x128xbf16>
    %54 = vector.shape_cast %53 : vector<1x2x128x128xbf16> to vector<2x128x128xbf16>
    %c1_31 = arith.constant 1 : index
    %c0_32 = arith.constant 0 : index
    %c0_33 = arith.constant 0 : index
    %55 = vector.load %arg5[%c1_31, %c0_32, %c0_33] : memref<2x3x128xf32, #tpu.memory_space<vmem>>, vector<1x3x128xf32>
    %56 = vector.shape_cast %55 : vector<1x3x128xf32> to vector<3x128xf32>
    %cst_34 = arith.constant dense<0.000000e+00> : vector<2x128xf32>
    %57 = tpu.matmul %50, %52, %cst_34 {dimension_numbers = #tpu.dot_dimension_numbers<[1], [0], [0], [1], [0, 0, 1, 1], [], []>} : vector<2x1024xbf16>, vector<1024x128xbf16>, vector<2x128xf32> -> vector<2x128xf32>
    %58 = vector.extract_strided_slice %56 {offsets = [0, 0], sizes = [1, 128], strides = [1, 1]} : vector<3x128xf32> to vector<1x128xf32>
    %59 = vector.broadcast %58 : vector<1x128xf32> to vector<2x128xf32>
    %60 = arith.addf %57, %59 : vector<2x128xf32>
    %c1_i32_35 = arith.constant 1 : i32
    %61 = arith.addi %0, %c1_i32_35 : i32
    %c2_i32_36 = arith.constant 2 : i32
    %62 = arith.muli %c2_i32_36, %61 : i32
    %63 = arith.index_cast %62 : i32 to index
    %64 = memref.load %arg1[%63] : memref<4xf32, #tpu.memory_space<smem>>
    %cst_37 = arith.constant 0.000000e+00 : f32
    %65 = vector.broadcast %cst_37 : f32 to vector<2x128xf32>
    %66 = arith.cmpf oge, %60, %65 : vector<2x128xf32>
    %67 = vector.broadcast %64 : f32 to vector<2x128xf32>
    %68 = arith.mulf %67, %60 : vector<2x128xf32>
    %69 = arith.select %66, %60, %68 : vector<2x128xi1>, vector<2x128xf32>
    %70 = arith.truncf %69 : vector<2x128xf32> to vector<2x128xbf16>
    %71 = vector.extract_strided_slice %54 {offsets = [0, 0, 0], sizes = [1, 128, 128], strides = [1, 1, 1]} : vector<2x128x128xbf16> to vector<1x128x128xbf16>
    %72 = vector.shape_cast %71 : vector<1x128x128xbf16> to vector<128x128xbf16>
    %cst_38 = arith.constant dense<0.000000e+00> : vector<2x128xf32>
    %73 = tpu.matmul %70, %72, %cst_38 {dimension_numbers = #tpu.dot_dimension_numbers<[1], [0], [0], [1], [0, 0, 1, 1], [], []>} : vector<2x128xbf16>, vector<128x128xbf16>, vector<2x128xf32> -> vector<2x128xf32>
    %74 = vector.extract_strided_slice %56 {offsets = [1, 0], sizes = [1, 128], strides = [1, 1]} : vector<3x128xf32> to vector<1x128xf32>
    %75 = vector.broadcast %74 : vector<1x128xf32> to vector<2x128xf32>
    %76 = arith.addf %73, %75 : vector<2x128xf32>
    %c1_i32_39 = arith.constant 1 : i32
    %77 = arith.addi %0, %c1_i32_39 : i32
    %c2_i32_40 = arith.constant 2 : i32
    %78 = arith.muli %c2_i32_40, %77 : i32
    %c1_i32_41 = arith.constant 1 : i32
    %79 = arith.addi %78, %c1_i32_41 : i32
    %80 = arith.index_cast %79 : i32 to index
    %81 = memref.load %arg1[%80] : memref<4xf32, #tpu.memory_space<smem>>
    %cst_42 = arith.constant 0.000000e+00 : f32
    %82 = vector.broadcast %cst_42 : f32 to vector<2x128xf32>
    %83 = arith.cmpf oge, %76, %82 : vector<2x128xf32>
    %84 = vector.broadcast %81 : f32 to vector<2x128xf32>
    %85 = arith.mulf %84, %76 : vector<2x128xf32>
    %86 = arith.select %83, %76, %85 : vector<2x128xi1>, vector<2x128xf32>
    %87 = arith.truncf %86 : vector<2x128xf32> to vector<2x128xbf16>
    %88 = vector.extract_strided_slice %54 {offsets = [1, 0, 0], sizes = [1, 128, 128], strides = [1, 1, 1]} : vector<2x128x128xbf16> to vector<1x128x128xbf16>
    %89 = vector.shape_cast %88 : vector<1x128x128xbf16> to vector<128x128xbf16>
    %cst_43 = arith.constant dense<0.000000e+00> : vector<2x128xf32>
    %90 = tpu.matmul %87, %89, %cst_43 {dimension_numbers = #tpu.dot_dimension_numbers<[1], [0], [0], [1], [0, 0, 1, 1], [], []>} : vector<2x128xbf16>, vector<128x128xbf16>, vector<2x128xf32> -> vector<2x128xf32>
    %91 = vector.extract_strided_slice %56 {offsets = [2, 0], sizes = [1, 128], strides = [1, 1]} : vector<3x128xf32> to vector<1x128xf32>
    %92 = vector.broadcast %91 : vector<1x128xf32> to vector<2x128xf32>
    %93 = arith.addf %90, %92 : vector<2x128xf32>
    %c1_44 = arith.constant 1 : index
    %c0_45 = arith.constant 0 : index
    %c0_46 = arith.constant 0 : index
    %94 = vector.load %arg6[%c1_44, %c0_45, %c0_46] : memref<2x2x128xf32, #tpu.memory_space<vmem>>, vector<1x2x128xf32>
    %95 = vector.shape_cast %94 : vector<1x2x128xf32> to vector<2x128xf32>
    %96 = vector.shape_cast %93 : vector<2x128xf32> to vector<1x2x128xf32>
    tpu.vector_store %arg6[%c1_44, %c0_45, %c0_46], %96 {strides = array<i32>} : memref<2x2x128xf32, #tpu.memory_space<vmem>>, vector<1x2x128xf32>,
    return
  }
  func.func @transform_0(%arg0: i32) -> i32 {
    %c0_i32 = arith.constant 0 : i32
    %c0_i32_0 = arith.constant 0 : i32
    return %c0_i32 : i32
  }
  func.func @transform_1(%arg0: i32) -> (i32, i32, i32) {
    %c0_i32 = arith.constant 0 : i32
    %c0_i32_0 = arith.constant 0 : i32
    %c0_i32_1 = arith.constant 0 : i32
    return %arg0, %c0_i32, %c0_i32_0 : i32, i32, i32
  }
  func.func @transform_2(%arg0: i32) -> (i32, i32, i32) {
    %c0_i32 = arith.constant 0 : i32
    %c0_i32_0 = arith.constant 0 : i32
    %c0_i32_1 = arith.constant 0 : i32
    return %arg0, %c0_i32, %c0_i32_0 : i32, i32, i32
  }
  func.func @transform_3(%arg0: i32) -> (i32, i32, i32, i32) {
    %c0_i32 = arith.constant 0 : i32
    %c0_i32_0 = arith.constant 0 : i32
    %c0_i32_1 = arith.constant 0 : i32
    %c0_i32_2 = arith.constant 0 : i32
    return %arg0, %c0_i32, %c0_i32_0, %c0_i32_1 : i32, i32, i32, i32
  }
  func.func @transform_4(%arg0: i32) -> (i32, i32, i32) {
    %c0_i32 = arith.constant 0 : i32
    %c0_i32_0 = arith.constant 0 : i32
    %c0_i32_1 = arith.constant 0 : i32
    return %arg0, %c0_i32, %c0_i32_0 : i32, i32, i32
  }
  func.func @transform_5(%arg0: i32) -> (i32, i32, i32) {
    %c0_i32 = arith.constant 0 : i32
    %c0_i32_0 = arith.constant 0 : i32
    %c0_i32_1 = arith.constant 0 : i32
    return %arg0, %c0_i32, %c0_i32_0 : i32, i32, i32
  }
}

</mosaic_0001>

<bundles_post_ra>
// kernel: forward.1
= control target key start
LH: loop header
LB: loop body
LE: loop exit
PB: predicated region body
PF: predicated region fallthrough
CT: control target
= control target key end

     0   :  { %10 = vsyncpa [#allocation4], 0  ;;  %s2734_s0 = inlined_call_operand.vmem [shape: f32[4], index: 0, kind: input, shape index: {}]   ;;  %s2735_s1 = inlined_call_operand.vmem [shape: bf16[2,2,1024], index: 1, kind: input, shape index: {}]   ;;  %s2736_s2 = inlined_call_operand.hbm [shape: bf16[2,1024,128], index: 2, kind: input, shape index: {}]   ;;  %s2737_s3 = inlined_call_operand.vmem [shape: bf16[2,2,128,128], index: 3, kind: input, shape index: {}]   ;;  %s2738_s4 = inlined_call_operand.vmem [shape: f32[2,3,128], index: 4, kind: input, shape index: {}]   ;;  %s2739_s5 = inlined_call_operand.vmem [shape: f32[2,2,128], index: 5, kind: output, shape index: {}]  }
   0x1   :  { %s17_s20 = sshll.u32 %s2734_s0, 4  ;;  %s18_s20 = int_to_ptr.vmem [resolvable:$true] %s17_s20 }
   0x2   :  { %11 = vsyncpa [#allocation3], 0  ;;  %s27_s23 = sshll.u32 %s2736_s2, 4  ;;  %s2560_s24 = smov [#allocation2]   ;;  %s28_s23 = int_to_ptr.hbm [resolvable:$true] %s27_s23 }
   0x3   :  { %20 = dma.vmem_to_smem %s18_s20, 16, %s2560_s24, [#allocation4]  }
   0x4   :  { %s2561_s25 = smov [#allocation5]   ;;  %s2562_s27 = smov 64  }
   0x5   :  { %s29_s26 = sshll.u32 %s2561_s25, 4  ;;  %s2563_s28 = smov 4   ;;  %s30_s26 = int_to_ptr.vmem [resolvable:$true] %s29_s26 }
   0x6   :  { %35 = dma.hbm_to_vmem [thread:$0]  %s28_s23, 16384, %s30_s26, [#allocation3], %s2562_s27, %s2562_s27, %s2563_s28  }
   0x7   :  { %2556 = dma.done.wait [#allocation4], 16  }
   0x8   :  { %2557 = vsyncadd [#allocation4], 4294967280 }
   0x9   :  { %2558 = dma.done.wait [#allocation3], 16384  }
   0xa   :  { %2559 = vsyncadd [#allocation3], 4294950912 }
   0xb   :  { %48 = sfence }
   0xc   :  { %v2363_v0 = vld [vmem:[#allocation5 + $0x38] sm:$0xff]  ;;  %v2362_v4 = vld [vmem:[#allocation5 + $0x30] sm:$0xff]  ;;  %v2361_v8 = vld [vmem:[#allocation5 + $0x28] sm:$0xff]  ;;  %s1966_s12 = sld [smem:[#allocation2 + $0x1]] }
   0xd   :  { %v2371_v1 = vld [vmem:[#allocation5 + $0x78] sm:$0xff]  ;;  %615 = vmatpush.bf16.msra.mxu0 %v2363_v0  ;;  %v2370_v5 = vld [vmem:[#allocation5 + $0x70] sm:$0xff]  ;;  %v2369_v9 = vld [vmem:[#allocation5 + $0x68] sm:$0xff]  ;;  %s2289_s14 = sld [smem:[#allocation2 + $0x2]] }
   0xe   :  { %v2379_v2 = vld [vmem:[#allocation5 + $0xb8] sm:$0xff]  ;;  %628 = vmatpush.bf16.msra.mxu1 %v2371_v1  ;;  %v2378_v6 = vld [vmem:[#allocation5 + $0xb0] sm:$0xff]  ;;  %v2377_v10 = vld [vmem:[#allocation5 + $0xa8] sm:$0xff]  ;;  %s2322_s21 = sld [smem:[#allocation2 + $0x3]] }
   0xf   :  { %v2387_v3 = vld [vmem:[#allocation5 + $0xf8] sm:$0xff]  ;;  %641 = vmatpush.bf16.msra.mxu2 %v2379_v2  ;;  %v2386_v7 = vld [vmem:[#allocation5 + $0xf0] sm:$0xff]  ;;  %v2385_v11 = vld [vmem:[#allocation5 + $0xe8] sm:$0xff] }
  0x10   :  { %654 = vmatpush.bf16.msra.mxu3 %v2387_v3  ;;  %v2360_v12 = vld [vmem:[#allocation5 + $0x20] sm:$0xff]  ;;  %v50_v16 = vld [vmem:[%s2735_s1] sm:$0xff]  ;;  %v2358_v21 = vld [vmem:[#allocation5 + $0x10] sm:$0xff] }
  0x11   :  { %616 = vmatpush.bf16.msra.mxu0 %v2362_v4  ;;  %v2368_v13 = vld [vmem:[#allocation5 + $0x60] sm:$0xff]  ;;  %v2359_v17 = vld [vmem:[#allocation5 + $0x18] sm:$0xff]  ;;  %214 = vst [vmem:[#allocation1] ss:$9 sm:$0xff] %v50_v16  ;;  %v2366_v22 = vld [vmem:[#allocation5 + $0x50] sm:$0xff] }
  0x12   :  { %629 = vmatpush.bf16.msra.mxu1 %v2370_v5  ;;  %v2376_v14 = vld [vmem:[#allocation5 + $0xa0] sm:$0xff]  ;;  %v2367_v18 = vld [vmem:[#allocation5 + $0x58] sm:$0xff]  ;;  %v2374_v23 = vld [vmem:[#allocation5 + $0x90] sm:$0xff] }
  0x13   :  { %642 = vmatpush.bf16.msra.mxu2 %v2378_v6  ;;  %v2384_v15 = vld [vmem:[#allocation5 + $0xe0] sm:$0xff]  ;;  %v2375_v19 = vld [vmem:[#allocation5 + $0x98] sm:$0xff]  ;;  %v2382_v24 = vld [vmem:[#allocation5 + $0xd0] sm:$0xff] }
  0x14   :  { %655 = vmatpush.bf16.msra.mxu3 %v2386_v7  ;;  %v2383_v20 = vld [vmem:[#allocation5 + $0xd8] sm:$0xff]  ;;  %v2357_v25 = vld [vmem:[#allocation5 + $0x8] sm:$0xff]  ;;  %v2356_v29 = vld [vmem:[#allocation5] sm:$0xff] }
  0x15   :  { %617 = vmatpush.bf16.msra.mxu0 %v2361_v8  ;;  %v2365_v26 = vld [vmem:[#allocation5 + $0x48] sm:$0xff]  ;;  %v2364_v30 = vld [vmem:[#allocation5 + $0x40] sm:$0xff]  ;;  %v2395_v33 = vld [vmem:[#allocation5 + $0x138] sm:$0xff] }
  0x16   :  { %630 = vmatpush.bf16.msra.mxu1 %v2369_v9  ;;  %v2373_v27 = vld [vmem:[#allocation5 + $0x88] sm:$0xff]  ;;  %v2372_v31 = vld [vmem:[#allocation5 + $0x80] sm:$0xff]  ;;  %v2403_v34 = vld [vmem:[#allocation5 + $0x178] sm:$0xff] }
  0x17   :  { %643 = vmatpush.bf16.msra.mxu2 %v2377_v10  ;;  %v2381_v28 = vld [vmem:[#allocation5 + $0xc8] sm:$0xff]  ;;  %v2380_v32 = vld [vmem:[#allocation5 + $0xc0] sm:$0xff]  ;;  %v2411_v35 = vld [vmem:[#allocation5 + $0x1b8] sm:$0xff] }
  0x18   :  { %656 = vmatpush.bf16.msra.mxu3 %v2385_v11  ;;  %v2419_v36 = vld [vmem:[#allocation5 + $0x1f8] sm:$0xff]  ;;  %v2394_v37 = vld [vmem:[#allocation5 + $0x130] sm:$0xff]  ;;  %v216_v42 = vld [vmem:[#allocation1 + $0x9] sm:$0xff] }
  0x19   :  { %618 = vmatpush.bf16.msra.mxu0 %v2360_v12  ;;  %v2402_v38 = vld [vmem:[#allocation5 + $0x170] sm:$0xff]  ;;  %v215_v40 = vld [vmem:[#allocation1] sm:$0xff]  ;;  %v2605_v44 = vld [vmem:[#allocation1 + $0x2d] sm:$0xff] }
  0x1a   :  { %631 = vmatpush.bf16.msra.mxu1 %v2368_v13  ;;  %v217_v39 = vld [vmem:[#allocation1 + $0x12] sm:$0xff]  ;;  %v218_v41 = vld [vmem:[#allocation1 + $0x1b] sm:$0xff]  ;;  %v2603_v43 = vld [vmem:[#allocation1 + $0x24] sm:$0xff] }
  0x1b   :  { %644 = vmatpush.bf16.msra.mxu2 %v2376_v14  ;;  %v2607_v45 = vld [vmem:[#allocation1 + $0x36] sm:$0xff]  ;;  %v2609_v46 = vld [vmem:[#allocation1 + $0x3f] sm:$0xff]  ;;  %v1999_v47 = vld [vmem:[%s2735_s1 + $0x8] sm:$0xff]  ;;  %s2663_s1 = sld [smem:[#allocation2]] }
  0x1c   :  { %657 = vmatpush.bf16.msra.mxu3 %v2384_v15  ;;  %v2410_v48 = vld [vmem:[#allocation5 + $0x1b0] sm:$0xff]  ;;  %1026 = vst [vmem:[#allocation1] ss:$9 sm:$0xff] %v1999_v47  ;;  %v2393_v50 = vld [vmem:[#allocation5 + $0x128] sm:$0xff]  ;;  %v2392_v54 = vld [vmem:[#allocation5 + $0x120] sm:$0xff] }
  0x1d   :  { %619 = vmatpush.bf16.msra.mxu0 %v2359_v17  ;;  %v2418_v49 = vld [vmem:[#allocation5 + $0x1f0] sm:$0xff]  ;;  %v2401_v51 = vld [vmem:[#allocation5 + $0x168] sm:$0xff]  ;;  %v2400_v55 = vld [vmem:[#allocation5 + $0x160] sm:$0xff] }
  0x1e   :  { %632 = vmatpush.bf16.msra.mxu1 %v2367_v18  ;;  %v2409_v52 = vld [vmem:[#allocation5 + $0x1a8] sm:$0xff]  ;;  %v2408_v56 = vld [vmem:[#allocation5 + $0x1a0] sm:$0xff]  ;;  %v2391_v58 = vld [vmem:[#allocation5 + $0x118] sm:$0xff] }
  0x1f   :  { %645 = vmatpush.bf16.msra.mxu2 %v2375_v19  ;;  %v2417_v53 = vld [vmem:[#allocation5 + $0x1e8] sm:$0xff]  ;;  %v2416_v57 = vld [vmem:[#allocation5 + $0x1e0] sm:$0xff]  ;;  %v2399_v59 = vld [vmem:[#allocation5 + $0x158] sm:$0xff] }
  0x20   :  { %658 = vmatpush.bf16.msra.mxu3 %v2383_v20  ;;  %v2407_v60 = vld [vmem:[#allocation5 + $0x198] sm:$0xff]  ;;  %v2390_v62 = vld [vmem:[#allocation5 + $0x110] sm:$0xff]  ;;  %v2389_v2 = vld [vmem:[#allocation5 + $0x108] sm:$0xff] }
  0x21   :  { %620 = vmatpush.bf16.msra.mxu0 %v2358_v21  ;;  %v2415_v61 = vld [vmem:[#allocation5 + $0x1d8] sm:$0xff]  ;;  %v2398_v63 = vld [vmem:[#allocation5 + $0x150] sm:$0xff]  ;;  %v2397_v3 = vld [vmem:[#allocation5 + $0x148] sm:$0xff] }
  0x22   :  { %633 = vmatpush.bf16.msra.mxu1 %v2366_v22  ;;  %v2406_v0 = vld [vmem:[#allocation5 + $0x190] sm:$0xff]  ;;  %v2405_v4 = vld [vmem:[#allocation5 + $0x188] sm:$0xff]  ;;  %v2388_v6 = vld [vmem:[#allocation5 + $0x100] sm:$0xff] }
  0x23   :  { %646 = vmatpush.bf16.msra.mxu2 %v2374_v23  ;;  %v2414_v1 = vld [vmem:[#allocation5 + $0x1d0] sm:$0xff]  ;;  %v2413_v5 = vld [vmem:[#allocation5 + $0x1c8] sm:$0xff]  ;;  %v2396_v7 = vld [vmem:[#allocation5 + $0x140] sm:$0xff] }
  0x24   :  { %659 = vmatpush.bf16.msra.mxu3 %v2382_v24  ;;  %v2404_v8 = vld [vmem:[#allocation5 + $0x180] sm:$0xff]  ;;  %v2427_v10 = vld [vmem:[%s2737_s3 + $0x38] sm:$0xff]  ;;  %v2426_v11 = vld [vmem:[%s2737_s3 + $0x30] sm:$0xff] }
  0x25   :  { %621 = vmatpush.bf16.msra.mxu0 %v2357_v25  ;;  %v2412_v9 = vld [vmem:[#allocation5 + $0x1c0] sm:$0xff]  ;;  %v2424_v13 = vld [vmem:[%s2737_s3 + $0x20] sm:$0xff]  ;;  %v2423_v14 = vld [vmem:[%s2737_s3 + $0x18] sm:$0xff] }
  0x26   :  { %634 = vmatpush.bf16.msra.mxu1 %v2365_v26  ;;  %v2425_v12 = vld [vmem:[%s2737_s3 + $0x28] sm:$0xff]  ;;  %v2422_v16 = vld [vmem:[%s2737_s3 + $0x10] sm:$0xff]  ;;  %v2420_v23 = vld [vmem:[%s2737_s3] sm:$0xff] }
  0x27   :  { %647 = vmatpush.bf16.msra.mxu2 %v2373_v27  ;;  %v2421_v18 = vld [vmem:[%s2737_s3 + $0x8] sm:$0xff]  ;;  %v2645_v24 = vld [vmem:[%s2738_s4] sm:$0x7]  ;;  %v2435_v27 = vld [vmem:[%s2737_s3 + $0x78] sm:$0xff] }
  0x28   :  { %660 = vmatpush.bf16.msra.mxu3 %v2381_v28  ;;  %v212_v25 = vperm.slane %v2645_v24, 0  ;;  %v2431_v47 = vld [vmem:[%s2737_s3 + $0x58] sm:$0xff] }
  0x29   :  { %622 = vmatpush.bf16.msra.mxu0 %v2356_v29  ;;  %v2443_v29 = vld [vmem:[#allocation5 + $0x238] sm:$0xff] }
  0x2a   :  { %635 = vmatpush.bf16.msra.mxu1 %v2364_v30  ;;  %v2451_v30 = vld [vmem:[#allocation5 + $0x278] sm:$0xff] }
  0x2b   :  { %648 = vmatpush.bf16.msra.mxu2 %v2372_v31  ;;  %v2434_v31 = vld [vmem:[%s2737_s3 + $0x70] sm:$0xff] }
  0x2c   :  { %661 = vmatpush.bf16.msra.mxu3 %v2380_v32  ;;  %623 = vmatmul.bf16.vlgmr.msra.gmra.mxu0 %v215_v40  ;;  %v2449_v40 = vld [vmem:[#allocation5 + $0x268] sm:$0xff] }
  0x2d   :  { %667 = vmatpush.bf16.msrb.mxu0 %v2395_v33  ;;  %636 = vmatmul.bf16.vlgmr.msra.gmra.mxu1 %v216_v42  ;;  %v2442_v33 = vld [vmem:[#allocation5 + $0x230] sm:$0xff]  ;;  %v2432_v42 = vld [vmem:[%s2737_s3 + $0x60] sm:$0xff] }
  0x2e   :  { %680 = vmatpush.bf16.msrb.mxu1 %v2403_v34  ;;  %649 = vmatmul.bf16.vlgmr.msra.gmra.mxu2 %v217_v39  ;;  %v2450_v34 = vld [vmem:[#allocation5 + $0x270] sm:$0xff]  ;;  %v2441_v39 = vld [vmem:[#allocation5 + $0x228] sm:$0xff] }
  0x2f   :  { %693 = vmatpush.bf16.msrb.mxu2 %v2411_v35  ;;  %662 = vmatmul.bf16.vlgmr.msra.gmra.mxu3 %v218_v41  ;;  %v2459_v35 = vld [vmem:[#allocation5 + $0x2b8] sm:$0xff]  ;;  %v2457_v41 = vld [vmem:[#allocation5 + $0x2a8] sm:$0xff] }
  0x30   :  { %706 = vmatpush.bf16.msrb.mxu3 %v2419_v36  ;;  %v2458_v36 = vld [vmem:[#allocation5 + $0x2b0] sm:$0xff] }
  0x31   :  { %668 = vmatpush.bf16.msrb.mxu0 %v2394_v37  ;;  %v2433_v37 = vld [vmem:[%s2737_s3 + $0x68] sm:$0xff] }
  0x32   :  { %681 = vmatpush.bf16.msrb.mxu1 %v2402_v38 }
  0x33   :  { %694 = vmatpush.bf16.msrb.mxu2 %v2410_v48 }
  0x34   :  { %707 = vmatpush.bf16.msrb.mxu3 %v2418_v49 }
  0x35   :  { %669 = vmatpush.bf16.msrb.mxu0 %v2393_v50 }
  0x36   :  { %682 = vmatpush.bf16.msrb.mxu1 %v2401_v51  ;;  %v2439_v51 = vld [vmem:[#allocation5 + $0x218] sm:$0xff] }
  0x37   :  { %695 = vmatpush.bf16.msrb.mxu2 %v2409_v52  ;;  %v2447_v52 = vld [vmem:[#allocation5 + $0x258] sm:$0xff] }
  0x38   :  { %708 = vmatpush.bf16.msrb.mxu3 %v2417_v53 }
  0x39   :  { %670 = vmatpush.bf16.msrb.mxu0 %v2392_v54  ;;  %v2455_v54 = vld [vmem:[#allocation5 + $0x298] sm:$0xff] }
  0x3a   :  { %683 = vmatpush.bf16.msrb.mxu1 %v2400_v55  ;;  %v2430_v55 = vld [vmem:[%s2737_s3 + $0x50] sm:$0xff] }
  0x3b   :  { %696 = vmatpush.bf16.msrb.mxu2 %v2408_v56  ;;  %v2438_v56 = vld [vmem:[#allocation5 + $0x210] sm:$0xff] }
  0x3c   :  { %709 = vmatpush.bf16.msrb.mxu3 %v2416_v57  ;;  %v2446_v57 = vld [vmem:[#allocation5 + $0x250] sm:$0xff] }
  0x3d   :  { %671 = vmatpush.bf16.msrb.mxu0 %v2391_v58 }
  0x3e   :  { %684 = vmatpush.bf16.msrb.mxu1 %v2399_v59  ;;  %v2454_v59 = vld [vmem:[#allocation5 + $0x290] sm:$0xff] }
  0x3f   :  { %697 = vmatpush.bf16.msrb.mxu2 %v2407_v60 }
  0x40   :  { %710 = vmatpush.bf16.msrb.mxu3 %v2415_v61 }
  0x41   :  { %672 = vmatpush.bf16.msrb.mxu0 %v2390_v62  ;;  %v2429_v62 = vld [vmem:[%s2737_s3 + $0x48] sm:$0xff] }
  0x42   :  { %685 = vmatpush.bf16.msrb.mxu1 %v2398_v63 }
  0x43   :  { %698 = vmatpush.bf16.msrb.mxu2 %v2406_v0 }
  0x44   :  { %711 = vmatpush.bf16.msrb.mxu3 %v2414_v1 }
  0x45   :  { %673 = vmatpush.bf16.msrb.mxu0 %v2389_v2  ;;  %v2437_v2 = vld [vmem:[#allocation5 + $0x208] sm:$0xff] }
  0x46   :  { %686 = vmatpush.bf16.msrb.mxu1 %v2397_v3  ;;  %v2445_v3 = vld [vmem:[#allocation5 + $0x248] sm:$0xff] }
  0x47   :  { %699 = vmatpush.bf16.msrb.mxu2 %v2405_v4  ;;  %v722_v4 = vstv %s2663_s1 }
  0x48   :  { %712 = vmatpush.bf16.msrb.mxu3 %v2413_v5 }
  0x49   :  { %674 = vmatpush.bf16.msrb.mxu0 %v2388_v6  ;;  %v2453_v6 = vld [vmem:[#allocation5 + $0x288] sm:$0xff] }
  0x4a   :  { %687 = vmatpush.bf16.msrb.mxu1 %v2396_v7  ;;  %v2428_v7 = vld [vmem:[%s2737_s3 + $0x40] sm:$0xff] }
  0x4b   :  { %700 = vmatpush.bf16.msrb.mxu2 %v2404_v8 }
  0x4c   :  { %713 = vmatpush.bf16.msrb.mxu3 %v2412_v9  ;;  %675 = vmatmul.bf16.vlgmr.msrb.gmra.mxu0 %v2603_v43  ;;  %v2467_v9 = vld [vmem:[#allocation5 + $0x2f8] sm:$0xff] }
  0x4d   :  { %688 = vmatmul.bf16.vlgmr.msrb.gmra.mxu1 %v2605_v44  ;;  %775 = vmatpush.bf16.msra.mxu0 %v2427_v10  ;;  %v2440_v44 = vld [vmem:[#allocation5 + $0x220] sm:$0xff] }
  0x4e   :  { %701 = vmatmul.bf16.vlgmr.msrb.gmra.mxu2 %v2607_v45  ;;  %844 = vmatpush.bf16.msra.mxu1 %v2435_v27  ;;  %v2448_v45 = vld [vmem:[#allocation5 + $0x260] sm:$0xff] }
  0x4f   :  { %714 = vmatmul.bf16.vlgmr.msrb.gmra.mxu3 %v2609_v46  ;;  %1427 = vmatpush.bf16.msra.mxu2 %v2443_v29  ;;  %v2456_v46 = vld [vmem:[#allocation5 + $0x2a0] sm:$0xff]  ;;  %v2462_v29 = vld [vmem:[#allocation5 + $0x2d0] sm:$0xff] }
  0x50   :  { %1440 = vmatpush.bf16.msra.mxu3 %v2451_v30  ;;  %v2436_v10 = vld [vmem:[#allocation5 + $0x200] sm:$0xff] }
  0x51   :  { %776 = vmatpush.bf16.msra.mxu0 %v2426_v11  ;;  %v2475_v11 = vld [vmem:[#allocation5 + $0x338] sm:$0xff]  ;;  %v2464_v27 = vld [vmem:[#allocation5 + $0x2e0] sm:$0xff] }
  0x52   :  { %845 = vmatpush.bf16.msra.mxu1 %v2434_v31  ;;  %v2472_v30 = vld [vmem:[#allocation5 + $0x320] sm:$0xff] }
  0x53   :  { %1428 = vmatpush.bf16.msra.mxu2 %v2442_v33  ;;  %v2480_v31 = vld [vmem:[#allocation5 + $0x360] sm:$0xff]  ;;  %v2461_v33 = vld [vmem:[#allocation5 + $0x2c8] sm:$0xff] }
  0x54   :  { %1441 = vmatpush.bf16.msra.mxu3 %v2450_v34  ;;  %v1027_v34 = vld [vmem:[#allocation1] sm:$0xff] }
  0x55   :  { %777 = vmatpush.bf16.msra.mxu0 %v2425_v12 }
  0x56   :  { %846 = vmatpush.bf16.msra.mxu1 %v2433_v37  ;;  %v2479_v37 = vld [vmem:[#allocation5 + $0x358] sm:$0xff] }
  0x57   :  { %1429 = vmatpush.bf16.msra.mxu2 %v2441_v39  ;;  %v2460_v39 = vld [vmem:[#allocation5 + $0x2c0] sm:$0xff] }
  0x58   :  { %1442 = vmatpush.bf16.msra.mxu3 %v2449_v40  ;;  %v2470_v40 = vld [vmem:[#allocation5 + $0x310] sm:$0xff] }
  0x59   :  { %778 = vmatpush.bf16.msra.mxu0 %v2424_v13  ;;  %v2444_v13 = vld [vmem:[#allocation5 + $0x240] sm:$0xff] }
  0x5a   :  { %847 = vmatpush.bf16.msra.mxu1 %v2432_v42  ;;  %v2488_v42 = vld [vmem:[#allocation5 + $0x3a0] sm:$0xff] }
  0x5b   :  { %1430 = vmatpush.bf16.msra.mxu2 %v2440_v44  ;;  %v1029_v44 = vld [vmem:[#allocation1 + $0x12] sm:$0xff] }
  0x5c   :  { %1443 = vmatpush.bf16.msra.mxu3 %v2448_v45  ;;  %v2477_v45 = vld [vmem:[#allocation5 + $0x348] sm:$0xff] }
  0x5d   :  { %779 = vmatpush.bf16.msra.mxu0 %v2423_v14  ;;  %v2452_v14 = vld [vmem:[#allocation5 + $0x280] sm:$0xff] }
  0x5e   :  { %848 = vmatpush.bf16.msra.mxu1 %v2431_v47  ;;  %v2468_v47 = vld [vmem:[#allocation5 + $0x300] sm:$0xff] }
  0x5f   :  { %1431 = vmatpush.bf16.msra.mxu2 %v2439_v51  ;;  %v1032_v51 = vld [vmem:[#allocation1 + $0x2d] sm:$0xff] }
  0x60   :  { %1444 = vmatpush.bf16.msra.mxu3 %v2447_v52  ;;  %v2485_v52 = vld [vmem:[#allocation5 + $0x388] sm:$0xff] }
  0x61   :  { %780 = vmatpush.bf16.msra.mxu0 %v2422_v16 }
  0x62   :  { %849 = vmatpush.bf16.msra.mxu1 %v2430_v55  ;;  %v1033_v55 = vld [vmem:[#allocation1 + $0x36] sm:$0xff] }
  0x63   :  { %1432 = vmatpush.bf16.msra.mxu2 %v2438_v56 }
  0x64   :  { %1445 = vmatpush.bf16.msra.mxu3 %v2446_v57  ;;  %v791_v57 = vstv %s1966_s12 }
  0x65   :  { %781 = vmatpush.bf16.msra.mxu0 %v2421_v18  ;;  %v2483_v18 = vld [vmem:[#allocation5 + $0x378] sm:$0xff] }
  0x66   :  { %850 = vmatpush.bf16.msra.mxu1 %v2429_v62 }
  0x67   :  { %1433 = vmatpush.bf16.msra.mxu2 %v2437_v2  ;;  %v2496_v2 = vld [vmem:[#allocation5 + $0x3e0] sm:$0xff] }
  0x68   :  { %1446 = vmatpush.bf16.msra.mxu3 %v2445_v3  ;;  %v1030_v3 = vld [vmem:[#allocation1 + $0x1b] sm:$0xff] }
  0x69   :  { %782 = vmatpush.bf16.msra.mxu0 %v2420_v23  ;;  %v2465_v23 = vld [vmem:[#allocation5 + $0x2e8] sm:$0xff] }
  0x6a   :  { %851 = vmatpush.bf16.msra.mxu1 %v2428_v7  ;;  %v2492_v7 = vld [vmem:[#allocation5 + $0x3c0] sm:$0xff] }
  0x6b   :  { %1434 = vmatpush.bf16.msra.mxu2 %v2436_v10 }
  0x6c   :  { %1447 = vmatpush.bf16.msra.mxu3 %v2444_v13  ;;  %v2506_v13 = vld [vmem:[%s2737_s3 + $0xb0] sm:$0xff] }
  0x6d   :  { %1453 = vmatpush.bf16.msrb.mxu0 %v2459_v35  ;;  %v2471_v35 = vld [vmem:[#allocation5 + $0x318] sm:$0xff] }
  0x6e   :  { %1466 = vmatpush.bf16.msrb.mxu1 %v2467_v9  ;;  %1435 = vmatmul.bf16.vlgmr.msra.gmra.mxu2 %v1027_v34 }
  0x6f   :  { %1479 = vmatpush.bf16.msrb.mxu2 %v2475_v11 }
  0x70   :  { %1492 = vmatpush.bf16.msrb.mxu3 %v2483_v18 }
  0x71   :  { %1454 = vmatpush.bf16.msrb.mxu0 %v2458_v36  ;;  %v1028_v36 = vld [vmem:[#allocation1 + $0x9] sm:$0xff] }
  0x72   :  { %1448 = vmatmul.bf16.vlgmr.msra.gmra.mxu3 %v1028_v36  ;;  %v2515_v36 = vld [vmem:[%s2737_s3 + $0xf8] sm:$0xff] }
  0x75   :  { %1455 = vmatpush.bf16.msrb.mxu0 %v2457_v41  ;;  %v2478_v41 = vld [vmem:[#allocation5 + $0x350] sm:$0xff] }
  0x79   :  { %1456 = vmatpush.bf16.msrb.mxu0 %v2456_v46  ;;  %v2487_v46 = vld [vmem:[#allocation5 + $0x398] sm:$0xff] }
  0x7d   :  { %1457 = vmatpush.bf16.msrb.mxu0 %v2455_v54  ;;  %v726_v54 = vperm.slane %v2645_v24, 1 }
  0x81   :  { %1458 = vmatpush.bf16.msrb.mxu0 %v2454_v59 }
  0x85   :  { %1459 = vmatpush.bf16.msrb.mxu0 %v2453_v6  ;;  %v2493_v6 = vld [vmem:[#allocation5 + $0x3c8] sm:$0xff] }
  0x89   :  { %1460 = vmatpush.bf16.msrb.mxu0 %v2452_v14 }
  0xa9   :  { %v624_v15 = vpop.f32.mrf.mxu0 }
  0xaa   :  { %v637_v17 = vpop.f32.mrf.mxu1  ;;  %v625_v32 = vadd.f32 %v624_v15, %v212_v25  ;;  %v2473_v25 = vld [vmem:[#allocation5 + $0x328] sm:$0xff] }
  0xac   :  { %v638_v38 = vadd.f32 %v637_v17, %v625_v32  ;;  %v2490_v32 = vld [vmem:[#allocation5 + $0x3b0] sm:$0xff] }
  0xb1   :  { %v650_v19 = vpop.f32.mrf.mxu2  ;;  %v626_v21 = vpop.f32.mrf.mxu0 }
  0xb2   :  { %v663_v20 = vpop.f32.mrf.mxu3  ;;  %v639_v22 = vpop.f32.mrf.mxu1  ;;  %v651_v43 = vadd.f32 %v650_v19, %v638_v38  ;;  %v2491_v19 = vld [vmem:[#allocation5 + $0x3b8] sm:$0xff]  ;;  %v2474_v21 = vld [vmem:[#allocation5 + $0x330] sm:$0xff]  ;;  %v2489_v38 = vld [vmem:[#allocation5 + $0x3a8] sm:$0xff] }
  0xb3   :  { %v2482_v22 = vld [vmem:[#allocation5 + $0x370] sm:$0xff]  ;;  %1480 = vmatpush.bf16.msrb.mxu2 %v2474_v21 }
  0xb4   :  { %v664_v48 = vadd.f32 %v663_v20, %v651_v43  ;;  %v2466_v20 = vld [vmem:[#allocation5 + $0x2f0] sm:$0xff]  ;;  %1493 = vmatpush.bf16.msrb.mxu3 %v2482_v22  ;;  %v2469_v43 = vld [vmem:[#allocation5 + $0x308] sm:$0xff] }
  0xb5   :  { %1467 = vmatpush.bf16.msrb.mxu1 %v2466_v20  ;;  %v2503_v22 = vld [vmem:[%s2737_s3 + $0x98] sm:$0xff] }
  0xb7   :  { %1481 = vmatpush.bf16.msrb.mxu2 %v2473_v25 }
  0xb9   :  { %v652_v26 = vpop.f32.mrf.mxu2  ;;  %1468 = vmatpush.bf16.msrb.mxu1 %v2465_v23  ;;  %v2502_v23 = vld [vmem:[%s2737_s3 + $0x90] sm:$0xff] }
  0xba   :  { %v665_v28 = vpop.f32.mrf.mxu3  ;;  %v2481_v26 = vld [vmem:[#allocation5 + $0x368] sm:$0xff] }
  0xbb   :  { %1494 = vmatpush.bf16.msrb.mxu3 %v2481_v26  ;;  %v2463_v28 = vld [vmem:[#allocation5 + $0x2d8] sm:$0xff]  ;;  %1482 = vmatpush.bf16.msrb.mxu2 %v2472_v30 }
  0xbd   :  { %1469 = vmatpush.bf16.msrb.mxu1 %v2464_v27  ;;  %v795_v27 = vperm.slane %v2645_v24, 2  ;;  %v2500_v24 = vld [vmem:[%s2737_s3 + $0x80] sm:$0xff] }
  0xbf   :  { %1495 = vmatpush.bf16.msrb.mxu3 %v2480_v31  ;;  %1483 = vmatpush.bf16.msrb.mxu2 %v2471_v35  ;;  %v2032_v31 = vld [vmem:[%s2738_s4 + $0x4] sm:$0x7] }
  0xc1   :  { %1470 = vmatpush.bf16.msrb.mxu1 %v2463_v28 }
  0xc3   :  { %1496 = vmatpush.bf16.msrb.mxu3 %v2479_v37  ;;  %1484 = vmatpush.bf16.msrb.mxu2 %v2470_v40  ;;  %v2514_v37 = vld [vmem:[%s2737_s3 + $0xf0] sm:$0xff] }
  0xc5   :  { %1471 = vmatpush.bf16.msrb.mxu1 %v2462_v29  ;;  %v2501_v29 = vld [vmem:[%s2737_s3 + $0x88] sm:$0xff] }
  0xc7   :  { %1497 = vmatpush.bf16.msrb.mxu3 %v2478_v41  ;;  %1485 = vmatpush.bf16.msrb.mxu2 %v2469_v43 }
  0xc9   :  { %v676_v49 = vpop.f32.mrf.mxu0  ;;  %1472 = vmatpush.bf16.msrb.mxu1 %v2461_v33  ;;  %v1024_v33 = vperm.slane %v2032_v31, 0 }
  0xca   :  { %v689_v50 = vpop.f32.mrf.mxu1  ;;  %v677_v53 = vadd.f32 %v676_v49, %v664_v48  ;;  %v2476_v48 = vld [vmem:[#allocation5 + $0x340] sm:$0xff]  ;;  %v2486_v49 = vld [vmem:[#allocation5 + $0x390] sm:$0xff] }
  0xcb   :  { %1498 = vmatpush.bf16.msrb.mxu3 %v2477_v45  ;;  %1486 = vmatpush.bf16.msrb.mxu2 %v2468_v47  ;;  %v2510_v47 = vld [vmem:[%s2737_s3 + $0xd0] sm:$0xff] }
  0xcc   :  { %v690_v58 = vadd.f32 %v689_v50, %v677_v53  ;;  %v1031_v50 = vld [vmem:[#allocation1 + $0x24] sm:$0xff] }
  0xcd   :  { %1473 = vmatpush.bf16.msrb.mxu1 %v2460_v39  ;;  %v2484_v53 = vld [vmem:[#allocation5 + $0x380] sm:$0xff] }
  0xce   :  { %1487 = vmatmul.bf16.vlgmr.msrb.gmra.mxu2 %v1031_v50  ;;  %v2513_v39 = vld [vmem:[%s2737_s3 + $0xe8] sm:$0xff] }
  0xcf   :  { %1499 = vmatpush.bf16.msrb.mxu3 %v2476_v48 }
  0xd1   :  { %v702_v60 = vpop.f32.mrf.mxu2  ;;  %v678_v0 = vpop.f32.mrf.mxu0 }
  0xd2   :  { %v715_v61 = vpop.f32.mrf.mxu3  ;;  %v703_v63 = vadd.f32 %v702_v60, %v690_v58  ;;  %v691_v1 = vpop.f32.mrf.mxu1  ;;  %1500 = vmatmul.bf16.vlgmr.msrb.gmra.mxu3 %v1032_v51  ;;  %v2498_v0 = vld [vmem:[#allocation5 + $0x3f0] sm:$0xff]  ;;  %v1535_v51 = vstv %s2289_s14 }
  0xd3   :  { %v2497_v1 = vld [vmem:[#allocation5 + $0x3e8] sm:$0xff]  ;;  %1657 = vmatpush.bf16.msra.mxu3 %v2515_v36 }
  0xd4   :  { %v716_v5 = vadd.f32 %v715_v61, %v703_v63  ;;  %v2499_v61 = vld [vmem:[#allocation5 + $0x3f8] sm:$0xff] }
  0xd6   :  { %vm721_vm0 = vcmp.ge.f32.partialorder %v716_v5, 0.0  ;;  %v723_v8 = vmul.f32 %v722_v4, %v716_v5  ;;  %v2495_v4 = vld [vmem:[#allocation5 + $0x3d8] sm:$0xff] }
  0xd7   :  { %1658 = vmatpush.bf16.msra.mxu3 %v2514_v37 }
  0xd8   :  { %v724_v12 = vsel %vm721_vm0, %v716_v5, %v723_v8  ;;  %v2494_v5 = vld [vmem:[#allocation5 + $0x3d0] sm:$0xff] }
  0xd9   :  { %v725_v15 = vpack.c.bf16 %v724_v12, %v724_v12  ;;  %v704_v16 = vpop.f32.mrf.mxu2  ;;  %v1034_v8 = vld [vmem:[#allocation1 + $0x3f] sm:$0xff] }
  0xda   :  { %v717_v17 = vpop.f32.mrf.mxu3  ;;  %v2507_v12 = vld [vmem:[%s2737_s3 + $0xb8] sm:$0xff] }
  0xdb   :  { %783 = vmatmul.bf16.vlgmr.msra.gmra.mxu0 %v725_v15  ;;  %1588 = vmatpush.bf16.msra.mxu2 %v2507_v12  ;;  %v2505_v17 = vld [vmem:[%s2737_s3 + $0xa8] sm:$0xff] }
  0xdc   :  { %1505 = vmatpush.bf16.msra.mxu0 %v2491_v19  ;;  %v2504_v19 = vld [vmem:[%s2737_s3 + $0xa0] sm:$0xff]  ;;  %1659 = vmatpush.bf16.msra.mxu3 %v2513_v39 }
  0xdf   :  { %1589 = vmatpush.bf16.msra.mxu2 %v2506_v13 }
  0xe0   :  { %1506 = vmatpush.bf16.msra.mxu0 %v2490_v32 }
  0xe3   :  { %1590 = vmatpush.bf16.msra.mxu2 %v2505_v17 }
  0xe4   :  { %1507 = vmatpush.bf16.msra.mxu0 %v2489_v38 }
  0xe7   :  { %1591 = vmatpush.bf16.msra.mxu2 %v2504_v19 }
  0xe8   :  { %1508 = vmatpush.bf16.msra.mxu0 %v2488_v42  ;;  %v2512_v42 = vld [vmem:[%s2737_s3 + $0xe0] sm:$0xff] }
  0xe9   :  { %1660 = vmatpush.bf16.msra.mxu3 %v2512_v42 }
  0xeb   :  { %1461 = vmatmul.bf16.vlgmr.msrb.gmra.mxu0 %v1029_v44  ;;  %1592 = vmatpush.bf16.msra.mxu2 %v2503_v22  ;;  %v2511_v44 = vld [vmem:[%s2737_s3 + $0xd8] sm:$0xff] }
  0xec   :  { %1509 = vmatpush.bf16.msra.mxu0 %v2487_v46 }
  0xed   :  { %1661 = vmatpush.bf16.msra.mxu3 %v2511_v44 }
  0xef   :  { %1593 = vmatpush.bf16.msra.mxu2 %v2502_v23 }
  0xf0   :  { %1510 = vmatpush.bf16.msra.mxu0 %v2486_v49 }
  0xf1   :  { %v1436_v9 = vpop.f32.mrf.mxu2  ;;  %1662 = vmatpush.bf16.msra.mxu3 %v2510_v47 }
  0xf2   :  { %v1437_v34 = vadd.f32 %v1436_v9, %v1024_v33 }
  0xf3   :  { %1594 = vmatpush.bf16.msra.mxu2 %v2501_v29 }
  0xf4   :  { %1511 = vmatpush.bf16.msra.mxu0 %v2485_v52 }
  0xf5   :  { %v1449_v10 = vpop.f32.mrf.mxu3 }
  0xf6   :  { %v1450_v38 = vadd.f32 %v1449_v10, %v1437_v34 }
  0xf7   :  { %1595 = vmatpush.bf16.msra.mxu2 %v2500_v24 }
  0xf8   :  { %1512 = vmatpush.bf16.msra.mxu0 %v2484_v53 }
  0xf9   :  { %v1438_v14 = vpop.f32.mrf.mxu2 }
  0xfb   :  { %1513 = vmatmul.bf16.vlgmr.msra.gmra.mxu0 %v1033_v55 }
  0xfd   :  { %v1451_v15 = vpop.f32.mrf.mxu3 }
 0x151   :  { %v1488_v18 = vpop.f32.mrf.mxu2 }
 0x155   :  { %v1501_v20 = vpop.f32.mrf.mxu3 }
 0x158   :  { %v784_v56 = vpop.f32.mrf.mxu0 }
 0x159   :  { %v785_v58 = vadd.f32 %v784_v56, %v726_v54  ;;  %v1490_v25 = vpop.f32.mrf.mxu2 }
 0x15b   :  { %vm790_vm1 = vcmp.ge.f32.partialorder %v785_v58, 0.0  ;;  %v792_v59 = vmul.f32 %v791_v57, %v785_v58  ;;  %v2509_v57 = vld [vmem:[%s2737_s3 + $0xc8] sm:$0xff] }
 0x15c   :  { %1663 = vmatpush.bf16.msra.mxu3 %v2509_v57 }
 0x15d   :  { %v793_v60 = vsel %vm790_vm1, %v785_v58, %v792_v59  ;;  %v1503_v26 = vpop.f32.mrf.mxu3  ;;  %v2508_v58 = vld [vmem:[%s2737_s3 + $0xc0] sm:$0xff]  ;;  %v1539_v59 = vperm.slane %v2032_v31, 1 }
 0x15e   :  { %v794_v62 = vpack.c.bf16 %v793_v60, %v793_v60 }
 0x160   :  { %v786_v63 = vpop.f32.mrf.mxu0  ;;  %852 = vmatmul.bf16.vlgmr.msra.gmra.mxu1 %v794_v62  ;;  %1664 = vmatpush.bf16.msra.mxu3 %v2508_v58 }
 0x161   :  { %1518 = vmatpush.bf16.msra.mxu1 %v2499_v61  ;;  %v1604_v61 = vstv %s2322_s21 }
 0x165   :  { %1519 = vmatpush.bf16.msra.mxu1 %v2498_v0 }
 0x168   :  { %v1462_v11 = vpop.f32.mrf.mxu0 }
 0x169   :  { %1520 = vmatpush.bf16.msra.mxu1 %v2497_v1  ;;  %v1463_v40 = vadd.f32 %v1462_v11, %v1450_v38 }
 0x16d   :  { %1521 = vmatpush.bf16.msra.mxu1 %v2496_v2 }
 0x170   :  { %1474 = vmatmul.bf16.vlgmr.msrb.gmra.mxu1 %v1030_v3  ;;  %v1464_v16 = vpop.f32.mrf.mxu0  ;;  %v1608_v3 = vperm.slane %v2032_v31, 2 }
 0x171   :  { %1522 = vmatpush.bf16.msra.mxu1 %v2495_v4 }
 0x175   :  { %1523 = vmatpush.bf16.msra.mxu1 %v2494_v5 }
 0x178   :  { %v1514_v21 = vpop.f32.mrf.mxu0 }
 0x179   :  { %1524 = vmatpush.bf16.msra.mxu1 %v2493_v6 }
 0x17d   :  { %1525 = vmatpush.bf16.msra.mxu1 %v2492_v7 }
 0x180   :  { %1526 = vmatmul.bf16.vlgmr.msra.gmra.mxu1 %v1034_v8  ;;  %v1516_v28 = vpop.f32.mrf.mxu0 }
 0x1dd   :  { %v853_v30 = vpop.f32.mrf.mxu1 }
 0x1de   :  { %v854_v32 = vadd.f32 %v853_v30, %v795_v27 }
 0x1e0   :  { %857 = vst [vmem:[%s2739_s5] sm:$0x3] %v854_v32 }
 0x1e5   :  { %v855_v35 = vpop.f32.mrf.mxu1 }
 0x1ed   :  { %v1475_v41 = vpop.f32.mrf.mxu1 }
 0x1ee   :  { %v1476_v43 = vadd.f32 %v1475_v41, %v1463_v40 }
 0x1f0   :  { %v1489_v45 = vadd.f32 %v1488_v18, %v1476_v43 }
 0x1f2   :  { %v1502_v48 = vadd.f32 %v1501_v20, %v1489_v45 }
 0x1f4   :  { %v1515_v49 = vadd.f32 %v1514_v21, %v1502_v48 }
 0x1f5   :  { %v1477_v46 = vpop.f32.mrf.mxu1 }
 0x1fd   :  { %v1527_v50 = vpop.f32.mrf.mxu1 }
 0x1fe   :  { %v1528_v52 = vadd.f32 %v1527_v50, %v1515_v49 }
 0x200   :  { %vm1534_vm2 = vcmp.ge.f32.partialorder %v1528_v52, 0.0  ;;  %v1536_v53 = vmul.f32 %v1535_v51, %v1528_v52 }
 0x202   :  { %v1537_v54 = vsel %vm1534_vm2, %v1528_v52, %v1536_v53 }
 0x203   :  { %v1538_v55 = vpack.c.bf16 %v1537_v54, %v1537_v54 }
 0x205   :  { %v1529_v56 = vpop.f32.mrf.mxu1  ;;  %1596 = vmatmul.bf16.vlgmr.msra.gmra.mxu2 %v1538_v55 }
 0x288   :  { %v1597_v60 = vpop.f32.mrf.mxu2 }
 0x289   :  { %v1598_v62 = vadd.f32 %v1597_v60, %v1539_v59 }
 0x28b   :  { %vm1603_vm3 = vcmp.ge.f32.partialorder %v1598_v62, 0.0  ;;  %v1605_v63 = vmul.f32 %v1604_v61, %v1598_v62 }
 0x28d   :  { %v1606_v0 = vsel %vm1603_vm3, %v1598_v62, %v1605_v63 }
 0x28e   :  { %v1607_v1 = vpack.c.bf16 %v1606_v0, %v1606_v0 }
 0x290   :  { %v1599_v2 = vpop.f32.mrf.mxu2  ;;  %1665 = vmatmul.bf16.vlgmr.msra.gmra.mxu3 %v1607_v1 }
 0x313   :  { %v1666_v4 = vpop.f32.mrf.mxu3 }
 0x314   :  { %v1667_v5 = vadd.f32 %v1666_v4, %v1608_v3 }
 0x316   :  { %2355 = vst [vmem:[%s2739_s5 + $0x2] sm:$0x3] %v1667_v5 }
 0x31b   :  { %v1668_v6 = vpop.f32.mrf.mxu3 }
 0x31c   :  { %1676 = vsyncpa [#allocation3], 1 }
 0x31d   :  { %1677 = vsyncpa [#allocation4], 1 }

</bundles_post_ra>
